<compile_context>
chip_gen: v5e
topology: v5e:2x2
jax: 0.10.0
libtpu: 0.0.40
codegen_flags: <defaults>
</compile_context>

<pallas_src>
import jax
import jax.numpy as jnp
from jax.experimental import pallas as pl
from jax.experimental.pallas import tpu as pltpu


def _round_up(x, m):
    return ((x + m - 1) // m) * m


def _bowst_kernel(xv_ref, xe_ref, xh_ref,
                  w1v_ref, w1e_ref, w1h_ref, b1_ref,
                  wc1_ref, bc1_ref, wc2_ref, bc2_ref,
                  out_ref):
    """Fused forward: 3x(Linear)+ReLU (as summed column-offset dots) ->
    Linear+ReLU -> Linear. f32 accumulation, bf16 MXU inputs, bf16 store."""
    bf16 = jnp.bfloat16
    f32 = jnp.float32

    # Cast f32 inputs to bf16 in VMEM (no wrapper-side HBM round-trip).
    xv = xv_ref[...].astype(bf16)
    xe = xe_ref[...].astype(bf16)
    xh = xh_ref[...].astype(bf16)

    # Three branch Linears fused: each weight occupies a disjoint column block
    # of the padded (H3P)-wide hidden, so the sum of dots == concat of branches.
    h1 = (jnp.dot(xv, w1v_ref[...], preferred_element_type=f32)
          + jnp.dot(xe, w1e_ref[...], preferred_element_type=f32)
          + jnp.dot(xh, w1h_ref[...], preferred_element_type=f32)
          + b1_ref[...])
    h1 = jnp.maximum(h1, 0.0).astype(bf16)
    # TODO(synk): dropout_values1 / dropout_values_embeddings1 / dropout_headers1
    # omitted (eval-mode identity).

    # fc_combined1 + ReLU
    h2 = jnp.dot(h1, wc1_ref[...], preferred_element_type=f32) + bc1_ref[...]
    h2 = jnp.maximum(h2, 0.0).astype(bf16)
    # TODO(synk): dropout_combined1 omitted (eval-mode identity).

    # fc_combined2
    out = jnp.dot(h2, wc2_ref[...], preferred_element_type=f32) + bc2_ref[...]
    out_ref[...] = out.astype(out_ref.dtype)


def _resident_spec(shape):
    """Constant-index operand spec; single-buffered if the API supports it."""
    index_map = lambda i: (0, 0)
    if hasattr(pl, "Buffered"):
        try:
            return pl.BlockSpec(shape, index_map, pipeline_mode=pl.Buffered(1))
        except TypeError:
            pass
    return pl.BlockSpec(shape, index_map)


def _batch_dim_semantics():
    """CORE_PARALLEL on v7x (2 TensorCores / chip); plain parallel elsewhere."""
    try:
        kind = jax.devices()[0].device_kind.lower()
    except Exception:
        kind = ""
    if ("v7" in kind or "7x" in kind) and hasattr(pltpu, "CORE_PARALLEL"):
        return pltpu.CORE_PARALLEL
    return "parallel"


def _physical_vmem_bytes():
    try:
        return int(pltpu.get_tpu_info().vmem_capacity_bytes)
    except Exception:
        return 64 << 20  # conservative (v7x per-core VMEM)


def bowst_forward(x_values, x_values_embeddings, x_headers, params):
    """Full BoWSTModel forward pass (eval mode) in one Pallas kernel.

    params: PyTorch-convention weights (out, in) and biases (out,).
    """
    bf16 = jnp.bfloat16
    f32 = jnp.float32

    B, Dv = x_values.shape
    De = x_values_embeddings.shape[1]
    Dh = x_headers.shape[1]
    H = params["fc_values1.weight"].shape[0]
    O = params["fc_combined2.weight"].shape[0]

    H3 = 3 * H
    H3P = _round_up(H3, 128)          # fused hidden, lane-padded
    HP = _round_up(H, 128)            # combined hidden, lane-padded
    OP = _round_up(O, 128)            # output, lane-padded (lane-dense stores)

    # ---- Parameters (bf16 weights, f32 biases), padded with zeros ----------
    # Padding columns have zero bias and zero downstream weight rows, so the
    # real outputs are unchanged.
    def branch_w(name, fan_in, col0):
        w = jnp.zeros((fan_in, H3P), bf16)
        return w.at[:, col0:col0 + H].set(params[name + ".weight"].T.astype(bf16))

    w1v = branch_w("fc_values1", Dv, 0)
    w1e = branch_w("fc_values_embeddings1", De, H)
    w1h = branch_w("fc_headers1", Dh, 2 * H)

    b1 = jnp.zeros((1, H3P), f32)
    b1 = b1.at[0, 0:H].set(params["fc_values1.bias"].astype(f32))
    b1 = b1.at[0, H:2 * H].set(params["fc_values_embeddings1.bias"].astype(f32))
    b1 = b1.at[0, 2 * H:3 * H].set(params["fc_headers1.bias"].astype(f32))

    wc1 = jnp.zeros((H3P, HP), bf16)
    wc1 = wc1.at[0:H3, 0:H].set(params["fc_combined1.weight"].T.astype(bf16))
    bc1 = jnp.zeros((1, HP), f32)
    bc1 = bc1.at[0, 0:H].set(params["fc_combined1.bias"].astype(f32))

    wc2 = jnp.zeros((HP, OP), bf16)
    wc2 = wc2.at[0:H, 0:O].set(params["fc_combined2.weight"].T.astype(bf16))
    bc2 = jnp.zeros((1, OP), f32)
    bc2 = bc2.at[0, 0:O].set(params["fc_combined2.bias"].astype(f32))

    # ---- Batch tiling --------------------------------------------------------
    TB = min(1024, _round_up(B, 8))       # large tile (mem-bound), multiple of 8
    Bp = _round_up(B, TB)
    if Bp != B:
        pad = ((0, Bp - B), (0, 0))
        x_values = jnp.pad(x_values, pad)
        x_values_embeddings = jnp.pad(x_values_embeddings, pad)
        x_headers = jnp.pad(x_headers, pad)

    grid = (Bp // TB,)

    # ---- BlockSpecs: x tiles pipelined, parameters resident ------------------
    in_specs = [
        pl.BlockSpec((TB, Dv), lambda i: (i, 0)),
        pl.BlockSpec((TB, De), lambda i: (i, 0)),
        pl.BlockSpec((TB, Dh), lambda i: (i, 0)),
        _resident_spec((Dv, H3P)),
        _resident_spec((De, H3P)),
        _resident_spec((Dh, H3P)),
        _resident_spec((1, H3P)),
        _resident_spec((H3P, HP)),
        _resident_spec((1, HP)),
        _resident_spec((HP, OP)),
        _resident_spec((1, OP)),
    ]
    out_spec = pl.BlockSpec((TB, OP), lambda i: (i, 0))

    # ---- VMEM budget (weights + double-buffered I/O + in-kernel temporaries) -
    weight_bytes = (w1v.size + w1e.size + w1h.size + wc1.size + wc2.size) * 2 \
        + (b1.size + bc1.size + bc2.size) * 4
    io_bytes = 2 * TB * (Dv + De + Dh) * 4 + 2 * TB * OP * 2
    interm_bytes = TB * H3P * (4 + 2) + TB * HP * (4 + 2) + TB * OP * 4
    budget = weight_bytes + io_bytes + interm_bytes + (8 << 20)   # + headroom
    vmem_cap = max(_physical_vmem_bytes() - (16 << 20), 32 << 20)
    vmem_limit = int(min(max(budget, 16 << 20), vmem_cap))

    out_padded = pl.pallas_call(
        _bowst_kernel,
        out_shape=jax.ShapeDtypeStruct((Bp, OP), bf16),
        grid=grid,
        in_specs=in_specs,
        out_specs=out_spec,
        compiler_params=pltpu.CompilerParams(
            dimension_semantics=(_batch_dim_semantics(),),
            vmem_limit_bytes=vmem_limit),
    )(x_values, x_values_embeddings, x_headers,
      w1v, w1e, w1h, b1, wc1, bc1, wc2, bc2)

    # Slice away padding; return f32 to match the PyTorch module's dtype.
    return out_padded[:B, :O].astype(f32)


def init_params(key, input_size_values, input_size_values_embeddings,
                input_size_headers, hidden_size, output_size):
    """Deterministic synthetic parameters with PyTorch nn.Linear shapes."""
    keys = jax.random.split(key, 10)

    def linear(kw, kb, fan_in, fan_out):
        bound = 1.0 / jnp.sqrt(fan_in)
        w = jax.random.uniform(kw, (fan_out, fan_in), jnp.float32, -bound, bound)
        b = jax.random.uniform(kb, (fan_out,), jnp.float32, -bound, bound)
        return w, b

    p = {}
    p["fc_values1.weight"], p["fc_values1.bias"] = linear(
        keys[0], keys[1], input_size_values, hidden_size)
    p["fc_values_embeddings1.weight"], p["fc_values_embeddings1.bias"] = linear(
        keys[2], keys[3], input_size_values_embeddings, hidden_size)
    p["fc_headers1.weight"], p["fc_headers1.bias"] = linear(
        keys[4], keys[5], input_size_headers, hidden_size)
    p["fc_combined1.weight"], p["fc_combined1.bias"] = linear(
        keys[6], keys[7], hidden_size * 3, hidden_size)
    p["fc_combined2.weight"], p["fc_combined2.bias"] = linear(
        keys[8], keys[9], hidden_size, output_size)
    return p


def reference_forward(x_values, x_values_embeddings, x_headers, params):
    """Pure-JAX f32 reference matching the PyTorch forward (eval mode)."""
    def lin(x, w, b):
        return x @ w.T + b

    hv = jax.nn.relu(lin(x_values, params["fc_values1.weight"],
                         params["fc_values1.bias"]))
    he = jax.nn.relu(lin(x_values_embeddings,
                         params["fc_values_embeddings1.weight"],
                         params["fc_values_embeddings1.bias"]))
    hh = jax.nn.relu(lin(x_headers, params["fc_headers1.weight"],
                         params["fc_headers1.bias"]))
    hc = jnp.concatenate([hv, he, hh], axis=1)
    hc = jax.nn.relu(lin(hc, params["fc_combined1.weight"],
                         params["fc_combined1.bias"]))
    return lin(hc, params["fc_combined2.weight"], params["fc_combined2.bias"])


if __name__ == "__main__":
    # Small synthetic shapes consistent with the module's forward.
    B = 8
    input_size_values = 64
    input_size_values_embeddings = 48
    input_size_headers = 32
    hidden_size = 32
    output_size = 16

    key = jax.random.PRNGKey(0)
    kx, kp = jax.random.split(key)
    kxv, kxe, kxh = jax.random.split(kx, 3)

    x_values = jax.random.normal(kxv, (B, input_size_values), jnp.float32)
    x_values_embeddings = jax.random.normal(
        kxe, (B, input_size_values_embeddings), jnp.float32)
    x_headers = jax.random.normal(kxh, (B, input_size_headers), jnp.float32)

    params = init_params(kp, input_size_values, input_size_values_embeddings,
                         input_size_headers, hidden_size, output_size)

    out = bowst_forward(x_values, x_values_embeddings, x_headers, params)
    out = jax.block_until_ready(out)

    ref = reference_forward(x_values, x_values_embeddings, x_headers, params)
    assert out.shape == (B, output_size)
    # bf16 weights / activations / output store with f32 accumulation vs f32 ref.
    assert jnp.allclose(out, ref, atol=3e-2, rtol=3e-2), (
        "mismatch vs reference, max abs err = "
        f"{float(jnp.max(jnp.abs(out - ref)))}")

    print("KERNEL_OK")
</pallas_src>

<mosaic_0001>
module attributes {stable_mosaic.version = 11 : i64} {
  func.func @_bowst_kernel(%arg0: i32, %arg1: memref<8x64xf32, #tpu.memory_space<vmem>>, %arg2: memref<8x48xf32, #tpu.memory_space<vmem>>, %arg3: memref<8x32xf32, #tpu.memory_space<vmem>>, %arg4: memref<64x128xbf16, #tpu.memory_space<vmem>>, %arg5: memref<48x128xbf16, #tpu.memory_space<vmem>>, %arg6: memref<32x128xbf16, #tpu.memory_space<vmem>>, %arg7: memref<1x128xf32, #tpu.memory_space<vmem>>, %arg8: memref<128x128xbf16, #tpu.memory_space<vmem>>, %arg9: memref<1x128xf32, #tpu.memory_space<vmem>>, %arg10: memref<128x128xbf16, #tpu.memory_space<vmem>>, %arg11: memref<1x128xf32, #tpu.memory_space<vmem>>, %arg12: memref<8x128xbf16, #tpu.memory_space<vmem>>) attributes {dimension_semantics = [#tpu.dimension_semantics<parallel>], iteration_bounds = array<i64: 1>, scalar_prefetch = 0 : i64, scratch_operands = 0 : i64, tpu.core_type = #tpu.core_type<tc>, window_params = [{transform_indices = @transform_0, window_bounds = array<i64: 8, 64>}, {transform_indices = @transform_1, window_bounds = array<i64: 8, 48>}, {transform_indices = @transform_2, window_bounds = array<i64: 8, 32>}, {pipeline_mode = #tpu.pipeline_mode<synchronous>, transform_indices = @transform_3, window_bounds = array<i64: 64, 128>}, {pipeline_mode = #tpu.pipeline_mode<synchronous>, transform_indices = @transform_4, window_bounds = array<i64: 48, 128>}, {pipeline_mode = #tpu.pipeline_mode<synchronous>, transform_indices = @transform_5, window_bounds = array<i64: 32, 128>}, {pipeline_mode = #tpu.pipeline_mode<synchronous>, transform_indices = @transform_6, window_bounds = array<i64: 1, 128>}, {pipeline_mode = #tpu.pipeline_mode<synchronous>, transform_indices = @transform_7, window_bounds = array<i64: 128, 128>}, {pipeline_mode = #tpu.pipeline_mode<synchronous>, transform_indices = @transform_8, window_bounds = array<i64: 1, 128>}, {pipeline_mode = #tpu.pipeline_mode<synchronous>, transform_indices = @transform_9, window_bounds = array<i64: 128, 128>}, {pipeline_mode = #tpu.pipeline_mode<synchronous>, transform_indices = @transform_10, window_bounds = array<i64: 1, 128>}, {transform_indices = @transform_11, window_bounds = array<i64: 8, 128>}]} {
    %c0 = arith.constant 0 : index
    %c0_0 = arith.constant 0 : index
    %0 = vector.load %arg1[%c0, %c0_0] : memref<8x64xf32, #tpu.memory_space<vmem>>, vector<8x64xf32>
    %1 = arith.truncf %0 : vector<8x64xf32> to vector<8x64xbf16>
    %c0_1 = arith.constant 0 : index
    %c0_2 = arith.constant 0 : index
    %2 = vector.load %arg2[%c0_1, %c0_2] : memref<8x48xf32, #tpu.memory_space<vmem>>, vector<8x48xf32>
    %3 = arith.truncf %2 : vector<8x48xf32> to vector<8x48xbf16>
    %c0_3 = arith.constant 0 : index
    %c0_4 = arith.constant 0 : index
    %4 = vector.load %arg3[%c0_3, %c0_4] : memref<8x32xf32, #tpu.memory_space<vmem>>, vector<8x32xf32>
    %5 = arith.truncf %4 : vector<8x32xf32> to vector<8x32xbf16>
    %c0_5 = arith.constant 0 : index
    %c0_6 = arith.constant 0 : index
    %6 = vector.load %arg4[%c0_5, %c0_6] : memref<64x128xbf16, #tpu.memory_space<vmem>>, vector<64x128xbf16>
    %cst = arith.constant dense<0.000000e+00> : vector<8x128xf32>
    %7 = tpu.matmul %1, %6, %cst {dimension_numbers = #tpu.dot_dimension_numbers<[1], [0], [0], [1], [0, 0, 1, 1], [], []>} : vector<8x64xbf16>, vector<64x128xbf16>, vector<8x128xf32> -> vector<8x128xf32>
    %c0_7 = arith.constant 0 : index
    %c0_8 = arith.constant 0 : index
    %8 = vector.load %arg5[%c0_7, %c0_8] : memref<48x128xbf16, #tpu.memory_space<vmem>>, vector<48x128xbf16>
    %cst_9 = arith.constant dense<0.000000e+00> : vector<8x128xf32>
    %9 = tpu.matmul %3, %8, %cst_9 {dimension_numbers = #tpu.dot_dimension_numbers<[1], [0], [0], [1], [0, 0, 1, 1], [], []>} : vector<8x48xbf16>, vector<48x128xbf16>, vector<8x128xf32> -> vector<8x128xf32>
    %10 = arith.addf %7, %9 : vector<8x128xf32>
    %c0_10 = arith.constant 0 : index
    %c0_11 = arith.constant 0 : index
    %11 = vector.load %arg6[%c0_10, %c0_11] : memref<32x128xbf16, #tpu.memory_space<vmem>>, vector<32x128xbf16>
    %cst_12 = arith.constant dense<0.000000e+00> : vector<8x128xf32>
    %12 = tpu.matmul %5, %11, %cst_12 {dimension_numbers = #tpu.dot_dimension_numbers<[1], [0], [0], [1], [0, 0, 1, 1], [], []>} : vector<8x32xbf16>, vector<32x128xbf16>, vector<8x128xf32> -> vector<8x128xf32>
    %13 = arith.addf %10, %12 : vector<8x128xf32>
    %c0_13 = arith.constant 0 : index
    %c0_14 = arith.constant 0 : index
    %14 = vector.load %arg7[%c0_13, %c0_14] : memref<1x128xf32, #tpu.memory_space<vmem>>, vector<1x128xf32>
    %15 = vector.broadcast %14 : vector<1x128xf32> to vector<8x128xf32>
    %16 = arith.addf %13, %15 : vector<8x128xf32>
    %cst_15 = arith.constant 0.000000e+00 : f32
    %17 = vector.broadcast %cst_15 : f32 to vector<8x128xf32>
    %18 = arith.maximumf %16, %17 : vector<8x128xf32>
    %19 = arith.truncf %18 : vector<8x128xf32> to vector<8x128xbf16>
    %c0_16 = arith.constant 0 : index
    %c0_17 = arith.constant 0 : index
    %20 = vector.load %arg8[%c0_16, %c0_17] : memref<128x128xbf16, #tpu.memory_space<vmem>>, vector<128x128xbf16>
    %cst_18 = arith.constant dense<0.000000e+00> : vector<8x128xf32>
    %21 = tpu.matmul %19, %20, %cst_18 {dimension_numbers = #tpu.dot_dimension_numbers<[1], [0], [0], [1], [0, 0, 1, 1], [], []>} : vector<8x128xbf16>, vector<128x128xbf16>, vector<8x128xf32> -> vector<8x128xf32>
    %c0_19 = arith.constant 0 : index
    %c0_20 = arith.constant 0 : index
    %22 = vector.load %arg9[%c0_19, %c0_20] : memref<1x128xf32, #tpu.memory_space<vmem>>, vector<1x128xf32>
    %23 = vector.broadcast %22 : vector<1x128xf32> to vector<8x128xf32>
    %24 = arith.addf %21, %23 : vector<8x128xf32>
    %cst_21 = arith.constant 0.000000e+00 : f32
    %25 = vector.broadcast %cst_21 : f32 to vector<8x128xf32>
    %26 = arith.maximumf %24, %25 : vector<8x128xf32>
    %27 = arith.truncf %26 : vector<8x128xf32> to vector<8x128xbf16>
    %c0_22 = arith.constant 0 : index
    %c0_23 = arith.constant 0 : index
    %28 = vector.load %arg10[%c0_22, %c0_23] : memref<128x128xbf16, #tpu.memory_space<vmem>>, vector<128x128xbf16>
    %cst_24 = arith.constant dense<0.000000e+00> : vector<8x128xf32>
    %29 = tpu.matmul %27, %28, %cst_24 {dimension_numbers = #tpu.dot_dimension_numbers<[1], [0], [0], [1], [0, 0, 1, 1], [], []>} : vector<8x128xbf16>, vector<128x128xbf16>, vector<8x128xf32> -> vector<8x128xf32>
    %c0_25 = arith.constant 0 : index
    %c0_26 = arith.constant 0 : index
    %30 = vector.load %arg11[%c0_25, %c0_26] : memref<1x128xf32, #tpu.memory_space<vmem>>, vector<1x128xf32>
    %31 = vector.broadcast %30 : vector<1x128xf32> to vector<8x128xf32>
    %32 = arith.addf %29, %31 : vector<8x128xf32>
    %33 = arith.truncf %32 : vector<8x128xf32> to vector<8x128xbf16>
    %c0_27 = arith.constant 0 : index
    %c0_28 = arith.constant 0 : index
    %34 = vector.load %arg12[%c0_27, %c0_28] : memref<8x128xbf16, #tpu.memory_space<vmem>>, vector<8x128xbf16>
    tpu.vector_store %arg12[%c0_27, %c0_28], %33 {strides = array<i32>} : memref<8x128xbf16, #tpu.memory_space<vmem>>, vector<8x128xbf16>,
    return
  }
  func.func @transform_0(%arg0: i32) -> (i32, i32) {
    %c0_i32 = arith.constant 0 : i32
    %c0_i32_0 = arith.constant 0 : i32
    return %arg0, %c0_i32 : i32, i32
  }
  func.func @transform_1(%arg0: i32) -> (i32, i32) {
    %c0_i32 = arith.constant 0 : i32
    %c0_i32_0 = arith.constant 0 : i32
    return %arg0, %c0_i32 : i32, i32
  }
  func.func @transform_2(%arg0: i32) -> (i32, i32) {
    %c0_i32 = arith.constant 0 : i32
    %c0_i32_0 = arith.constant 0 : i32
    return %arg0, %c0_i32 : i32, i32
  }
  func.func @transform_3(%arg0: i32) -> (i32, i32) {
    %c0_i32 = arith.constant 0 : i32
    %c0_i32_0 = arith.constant 0 : i32
    %c0_i32_1 = arith.constant 0 : i32
    return %c0_i32, %c0_i32_0 : i32, i32
  }
  func.func @transform_4(%arg0: i32) -> (i32, i32) {
    %c0_i32 = arith.constant 0 : i32
    %c0_i32_0 = arith.constant 0 : i32
    %c0_i32_1 = arith.constant 0 : i32
    return %c0_i32, %c0_i32_0 : i32, i32
  }
  func.func @transform_5(%arg0: i32) -> (i32, i32) {
    %c0_i32 = arith.constant 0 : i32
    %c0_i32_0 = arith.constant 0 : i32
    %c0_i32_1 = arith.constant 0 : i32
    return %c0_i32, %c0_i32_0 : i32, i32
  }
  func.func @transform_6(%arg0: i32) -> (i32, i32) {
    %c0_i32 = arith.constant 0 : i32
    %c0_i32_0 = arith.constant 0 : i32
    %c0_i32_1 = arith.constant 0 : i32
    return %c0_i32, %c0_i32_0 : i32, i32
  }
  func.func @transform_7(%arg0: i32) -> (i32, i32) {
    %c0_i32 = arith.constant 0 : i32
    %c0_i32_0 = arith.constant 0 : i32
    %c0_i32_1 = arith.constant 0 : i32
    return %c0_i32, %c0_i32_0 : i32, i32
  }
  func.func @transform_8(%arg0: i32) -> (i32, i32) {
    %c0_i32 = arith.constant 0 : i32
    %c0_i32_0 = arith.constant 0 : i32
    %c0_i32_1 = arith.constant 0 : i32
    return %c0_i32, %c0_i32_0 : i32, i32
  }
  func.func @transform_9(%arg0: i32) -> (i32, i32) {
    %c0_i32 = arith.constant 0 : i32
    %c0_i32_0 = arith.constant 0 : i32
    %c0_i32_1 = arith.constant 0 : i32
    return %c0_i32, %c0_i32_0 : i32, i32
  }
  func.func @transform_10(%arg0: i32) -> (i32, i32) {
    %c0_i32 = arith.constant 0 : i32
    %c0_i32_0 = arith.constant 0 : i32
    %c0_i32_1 = arith.constant 0 : i32
    return %c0_i32, %c0_i32_0 : i32, i32
  }
  func.func @transform_11(%arg0: i32) -> (i32, i32) {
    %c0_i32 = arith.constant 0 : i32
    %c0_i32_0 = arith.constant 0 : i32
    return %arg0, %c0_i32 : i32, i32
  }
}

</mosaic_0001>

<bundles_post_ra>
// kernel: tpu_custom_call.1
= control target key start
LH: loop header
LB: loop body
LE: loop exit
PB: predicated region body
PF: predicated region fallthrough
CT: control target
= control target key end

     0   :  { %16 = vsyncpa [#allocation3], 0  ;;  %s975_s0 = inlined_call_operand.hbm [shape: f32[8,64], index: 0, kind: input, shape index: {}]   ;;  %s976_s1 = inlined_call_operand.hbm [shape: f32[8,48], index: 1, kind: input, shape index: {}]   ;;  %s977_s2 = inlined_call_operand.hbm [shape: f32[8,32], index: 2, kind: input, shape index: {}]   ;;  %s978_s3 = inlined_call_operand.hbm [shape: bf16[64,128], index: 3, kind: input, shape index: {}]   ;;  %s979_s4 = inlined_call_operand.hbm [shape: bf16[48,128], index: 4, kind: input, shape index: {}]   ;;  %s980_s5 = inlined_call_operand.hbm [shape: bf16[32,128], index: 5, kind: input, shape index: {}]   ;;  %s981_s6 = inlined_call_operand.vmem [shape: f32[1,128], index: 6, kind: input, shape index: {}]   ;;  %s982_s7 = inlined_call_operand.hbm [shape: bf16[128,128], index: 7, kind: input, shape index: {}]   ;;  %s983_s8 = inlined_call_operand.vmem [shape: f32[1,128], index: 8, kind: input, shape index: {}]   ;;  %s984_s9 = inlined_call_operand.hbm [shape: bf16[128,128], index: 9, kind: input, shape index: {}]   ;;  %s985_s10 = inlined_call_operand.vmem [shape: f32[1,128], index: 10, kind: input, shape index: {}]   ;;  %s986_s11 = inlined_call_operand.hbm [shape: bf16[8,128], index: 11, kind: output, shape index: {}]  }
   0x1   :  { %17 = vsyncpa [#allocation6], 0 }
   0x2   :  { %18 = vsyncpa [#allocation9], 0 }
   0x3   :  { %19 = vsyncpa [#allocation12], 0 }
   0x4   :  { %20 = vsyncpa [#allocation15], 0  ;;  %s38_s19 = sshll.u32 %s976_s1, 4  ;;  %s39_s19 = int_to_ptr.hbm [resolvable:$true] %s38_s19 }
   0x5   :  { %21 = vsyncpa [#allocation4], 0  ;;  %s853_s20 = smov [#allocation5]   ;;  %s59_s24 = sshll.u32 %s978_s3, 4  ;;  %s60_s24 = int_to_ptr.hbm [resolvable:$true] %s59_s24 }
   0x6   :  { %s40_s21 = sshll.u32 %s853_s20, 4  ;;  %s854_s25 = smov [#allocation8]   ;;  %s41_s21 = int_to_ptr.vmem [resolvable:$true] %s40_s21 }
   0x7   :  { %43 = dma.hbm_to_vmem [thread:$0]  %s39_s19, 128, %s41_s21, [#allocation6]  }
   0x8   :  { %s61_s26 = sshll.u32 %s854_s25, 4  ;;  %s855_s27 = smov 64   ;;  %s62_s26 = int_to_ptr.vmem [resolvable:$true] %s61_s26 }
   0x9   :  { %s856_s28 = smov 4   ;;  %s85_s30 = sshll.u32 %s980_s5, 4  ;;  %s86_s30 = int_to_ptr.hbm [resolvable:$true] %s85_s30 }
   0xa   :  { %67 = dma.hbm_to_vmem [thread:$0]  %s60_s24, 512, %s62_s26, [#allocation9], %s855_s27, %s855_s27, %s856_s28  }
   0xb   :  { %s857_s12 = smov [#allocation11]   ;;  %s27_s15 = sshll.u32 %s975_s0, 4  ;;  %s28_s15 = int_to_ptr.hbm [resolvable:$true] %s27_s15 }
   0xc   :  { %s87_s13 = sshll.u32 %s857_s12, 4  ;;  %s858_s16 = smov [#allocation2]   ;;  %s88_s13 = int_to_ptr.vmem [resolvable:$true] %s87_s13 }
   0xd   :  { %93 = dma.hbm_to_vmem [thread:$0]  %s86_s30, 256, %s88_s13, [#allocation12], %s855_s27, %s855_s27, %s856_s28  }
   0xe   :  { %s29_s17 = sshll.u32 %s858_s16, 4  ;;  %s49_s20 = sshll.u32 %s977_s2, 4  ;;  %s30_s17 = int_to_ptr.vmem [resolvable:$true] %s29_s17  ;;  %s50_s20 = int_to_ptr.hbm [resolvable:$true] %s49_s20 }
   0xf   :  { %32 = dma.hbm_to_vmem [thread:$0]  %s28_s15, 128, %s30_s17, [#allocation3]  }
  0x10   :  { %s72_s22 = sshll.u32 %s979_s4, 4  ;;  %s859_s23 = smov [#allocation7]   ;;  %s73_s22 = int_to_ptr.hbm [resolvable:$true] %s72_s22 }
  0x11   :  { %s51_s0 = sshll.u32 %s859_s23, 4  ;;  %s860_s24 = smov [#allocation10]   ;;  %s52_s0 = int_to_ptr.vmem [resolvable:$true] %s51_s0 }
  0x12   :  { %54 = dma.hbm_to_vmem [thread:$0]  %s50_s20, 128, %s52_s0, [#allocation6]  }
  0x13   :  { %s74_s25 = sshll.u32 %s860_s24, 4  ;;  %s100_s29 = sshll.u32 %s982_s7, 4  ;;  %s75_s25 = int_to_ptr.vmem [resolvable:$true] %s74_s25  ;;  %s101_s29 = int_to_ptr.hbm [resolvable:$true] %s100_s29 }
  0x14   :  { %80 = dma.hbm_to_vmem [thread:$0]  %s73_s22, 384, %s75_s25, [#allocation9], %s855_s27, %s855_s27, %s856_s28  }
  0x15   :  { %s115_s4 = sshll.u32 %s984_s9, 4  ;;  %s861_s12 = smov [#allocation13]   ;;  %s116_s4 = int_to_ptr.hbm [resolvable:$true] %s115_s4 }
  0x16   :  { %s102_s13 = sshll.u32 %s861_s12, 4  ;;  %s862_s3 = smov [#allocation14]   ;;  %s103_s13 = int_to_ptr.vmem [resolvable:$true] %s102_s13 }
  0x17   :  { %108 = dma.hbm_to_vmem [thread:$0]  %s101_s29, 1024, %s103_s13, [#allocation12], %s855_s27, %s855_s27, %s856_s28  }
  0x18   :  { %s117_s7 = sshll.u32 %s862_s3, 4  ;;  %s118_s7 = int_to_ptr.vmem [resolvable:$true] %s117_s7 }
  0x19   :  { %123 = dma.hbm_to_vmem [thread:$0]  %s116_s4, 1024, %s118_s7, [#allocation15], %s855_s27, %s855_s27, %s856_s28  }
  0x1a   :  { %841 = dma.done.wait [#allocation3], 128  }
  0x1b   :  { %842 = vsyncadd [#allocation3], 4294967168 }
  0x1c   :  { %843 = dma.done.wait [#allocation6], 256  }
  0x1d   :  { %844 = vsyncadd [#allocation6], 4294967040 }
  0x1e   :  { %845 = dma.done.wait [#allocation9], 896  }
  0x1f   :  { %846 = vsyncadd [#allocation9], 4294966400 }
  0x20   :  { %847 = dma.done.wait [#allocation12], 1280  }
  0x21   :  { %848 = vsyncadd [#allocation12], 4294966016 }
  0x22   :  { %849 = dma.done.wait [#allocation15], 1024  }
  0x23   :  { %850 = vsyncadd [#allocation15], 4294966272  ;;  %v592_v0 = vld [vmem:[#allocation10 + $0x10] sm:$0xff]  ;;  %v589_v1 = vld [vmem:[#allocation8 + $0x18] sm:$0xff]  ;;  %vm197_vm0 = vcmask 392192   ;;  %vm238_vm1 = vcmask 523264  }
  0x24   :  { %206 = vmatpush.bf16.msra.mxu0 %v592_v0  ;;  %246 = vmatpush.bf16.msra.mxu1 %v589_v1  ;;  %v591_v2 = vld [vmem:[#allocation10 + $0x8] sm:$0xff]  ;;  %v588_v3 = vld [vmem:[#allocation8 + $0x10] sm:$0xff]  ;;  %v602_v4 = vld [vmem:[#allocation13 + $0x38] sm:$0xff]  ;;  %vm271_vm2 = vcmask 261120   ;;  %s863_s16 = smov [#allocation16]   ;;  %s469_s20 = sshll.u32 %s986_s11, 4  ;;  %s470_s20 = int_to_ptr.hbm [resolvable:$true] %s469_s20 }
  0x25   :  { %v590_v5 = vld [vmem:[#allocation10] sm:$0xff]  ;;  %v587_v6 = vld [vmem:[#allocation8 + $0x8] sm:$0xff]  ;;  %v161_v7 = vld [vmem:[#allocation5] sm:$0xff]  ;;  %364 = vmatpush.bf16.msra.mxu3 %v602_v4  ;;  %s467_s17 = sshll.u32 %s863_s16, 4  ;;  %s468_s17 = int_to_ptr.vmem [resolvable:$true] %s467_s17 }
  0x26   :  { %v594_v8 = vld [vmem:[#allocation11 + $0x8] sm:$0xff]  ;;  %v601_v9 = vld [vmem:[#allocation13 + $0x30] sm:$0xff]  ;;  %v162_v10 = vpack.c.bf16 %v161_v7, %v161_v7  ;;  %v159_v12 = vld [vmem:[#allocation2] sm:$0xff] }
  0x27   :  { %v586_v11 = vld [vmem:[#allocation8] sm:$0xff]  ;;  %v593_v13 = vld [vmem:[#allocation11] sm:$0xff]  ;;  %v160_v14 = vpack.c.bf16 %v159_v12, %v159_v12  ;;  %v600_v17 = vld [vmem:[#allocation13 + $0x28] sm:$0xff] }
  0x28   :  { %207 = vmatpush.bf16.msra.mxu0 %v591_v2  ;;  %247 = vmatpush.bf16.msra.mxu1 %v588_v3  ;;  %v163_v15 = vld [vmem:[#allocation7] sm:$0xff]  ;;  %v599_v18 = vld [vmem:[#allocation13 + $0x20] sm:$0xff]  ;;  %v598_v19 = vld [vmem:[#allocation13 + $0x18] sm:$0xff] }
  0x29   :  { %365 = vmatpush.bf16.msra.mxu3 %v601_v9  ;;  %v164_v16 = vpack.c.bf16 %v163_v15, %v163_v15  ;;  %v597_v20 = vld [vmem:[#allocation13 + $0x10] sm:$0xff]  ;;  %v596_v21 = vld [vmem:[#allocation13 + $0x8] sm:$0xff]  ;;  %v595_v22 = vld [vmem:[#allocation13] sm:$0xff] }
  0x2a   :  { %v610_v23 = vld [vmem:[#allocation14 + $0x38] sm:$0xff]  ;;  %v609_v24 = vld [vmem:[#allocation14 + $0x30] sm:$0xff]  ;;  %v608_v25 = vld [vmem:[#allocation14 + $0x28] sm:$0xff] }
  0x2b   :  { %447 = vmatpush.bf16.msra.mxu2 %v610_v23  ;;  %v607_v27 = vld [vmem:[#allocation14 + $0x20] sm:$0xff]  ;;  %v606_v29 = vld [vmem:[#allocation14 + $0x18] sm:$0xff]  ;;  %v605_v31 = vld [vmem:[#allocation14 + $0x10] sm:$0xff] }
  0x2c   :  { %208 = vmatpush.bf16.msra.mxu0 %v590_v5  ;;  %248 = vmatpush.bf16.msra.mxu1 %v587_v6  ;;  %v622_v34 = vld [vmem:[%s981_s6] ss:$0 sm:$0xff]  ;;  %v604_v41 = vld [vmem:[#allocation14 + $0x8] sm:$0xff] }
  0x2d   :  { %366 = vmatpush.bf16.msra.mxu3 %v600_v17  ;;  %v603_v42 = vld [vmem:[#allocation14] sm:$0xff] }
  0x2e   :  { %v623_v43 = vld [vmem:[%s983_s8] ss:$0 sm:$0xff] }
  0x2f   :  { %495 = vmatmul.msk.bf16.vlgmr.msra.gmra.mxu0 %vm197_vm0, %v162_v10  ;;  %448 = vmatpush.bf16.msra.mxu2 %v609_v24  ;;  %v624_v49 = vld [vmem:[%s985_s10] ss:$0 sm:$0xff] }
  0x30   :  { %281 = vmatpush.bf16.msrb.mxu0 %v594_v8  ;;  %249 = vmatpush.bf16.msra.mxu1 %v586_v11 }
  0x31   :  { %367 = vmatpush.bf16.msra.mxu3 %v599_v18 }
  0x33   :  { %512 = vmatmul.msk.bf16.vlgmr.msra.gmra.mxu1 %vm238_vm1, %v160_v14  ;;  %449 = vmatpush.bf16.msra.mxu2 %v608_v25 }
  0x34   :  { %282 = vmatpush.bf16.msrb.mxu0 %v593_v13 }
  0x35   :  { %368 = vmatpush.bf16.msra.mxu3 %v598_v19 }
  0x37   :  { %450 = vmatpush.bf16.msra.mxu2 %v607_v27 }
  0x39   :  { %369 = vmatpush.bf16.msra.mxu3 %v597_v20 }
  0x3b   :  { %451 = vmatpush.bf16.msra.mxu2 %v606_v29 }
  0x3d   :  { %370 = vmatpush.bf16.msra.mxu3 %v596_v21 }
  0x3f   :  { %521 = vmatmul.msk.bf16.vlgmr.msrb.gmra.mxu0 %vm271_vm2, %v164_v16  ;;  %452 = vmatpush.bf16.msra.mxu2 %v605_v31 }
  0x41   :  { %371 = vmatpush.bf16.msra.mxu3 %v595_v22 }
  0x43   :  { %453 = vmatpush.bf16.msra.mxu2 %v604_v41 }
  0x47   :  { %454 = vmatpush.bf16.msra.mxu2 %v603_v42 }
  0xac   :  { %v210_v26 = vpop.f32.mrf.mxu0 }
  0xb0   :  { %v251_v28 = vpop.f32.mrf.mxu1 }
  0xb1   :  { %v252_v33 = vadd.f32 %v251_v28, %v210_v26 }
  0xb4   :  { %v212_v30 = vpop.f32.mrf.mxu0 }
  0xb8   :  { %v253_v32 = vpop.f32.mrf.mxu1 }
  0xbc   :  { %v284_v35 = vpop.f32.mrf.mxu0 }
  0xbd   :  { %v288_v36 = vadd.f32 %v284_v35, %v252_v33 }
  0xbf   :  { %v293_v37 = vadd.f32 %v622_v34, %v288_v36 }
  0xc1   :  { %v294_v38 = vmax.f32 %v293_v37, 0.0 }
  0xc3   :  { %v295_v39 = vpack.c.bf16 %v294_v38, %v294_v38 }
  0xc4   :  { %v286_v40 = vpop.f32.mrf.mxu0 }
  0xc5   :  { %372 = vmatmul.bf16.vlgmr.msra.gmra.mxu3 %v295_v39 }
 0x148   :  { %v373_v44 = vpop.f32.mrf.mxu3 }
 0x149   :  { %v374_v45 = vadd.f32 %v623_v43, %v373_v44 }
 0x14b   :  { %v377_v46 = vmax.f32 %v374_v45, 0.0 }
 0x14d   :  { %v378_v47 = vpack.c.bf16 %v377_v46, %v377_v46 }
 0x14f   :  { %455 = vmatmul.bf16.vlgmr.msra.gmra.mxu2 %v378_v47 }
 0x150   :  { %v375_v48 = vpop.f32.mrf.mxu3 }
 0x1d2   :  { %v456_v50 = vpop.f32.mrf.mxu2 }
 0x1d3   :  { %v457_v51 = vadd.f32 %v624_v49, %v456_v50 }
 0x1d5   :  { %v460_v52 = vpack.c.bf16 %v457_v51, %v457_v51 }
 0x1d7   :  { %461 = vst [vmem:[#allocation16] sm:$0xf] %v460_v52 }
 0x1d8   :  { %472 = dma.vmem_to_hbm [thread:$0]  %s468_s17, 64, %s470_s20, [#allocation4]  }
 0x1da   :  { %v458_v53 = vpop.f32.mrf.mxu2 }
 0x1db   :  { %851 = dma.done.wait [#allocation4], 64  }
 0x1dc   :  { %852 = vsyncadd [#allocation4], 4294967232 }
 0x1dd   :  { %477 = vsyncpa [#allocation3], 1 }
 0x1de   :  { %478 = vsyncpa [#allocation6], 1 }
 0x1df   :  { %479 = vsyncpa [#allocation9], 1 }
 0x1e0   :  { %480 = vsyncpa [#allocation12], 1 }
 0x1e1   :  { %481 = vsyncpa [#allocation15], 1 }
 0x1e2   :  { %482 = vsyncpa [#allocation4], 1 }

</bundles_post_ra>
